<compile_context>
chip_gen: v6e
topology: v6e:2x2x1
jax: 0.10.0
libtpu: 0.0.40
codegen_flags: <defaults>
</compile_context>

<pallas_src>
import jax
import jax.numpy as jnp
from jax.experimental import pallas as pl
from jax.experimental.pallas import tpu as pltpu


def _mlp_kernel(x_ref, w_ref, b_ref, o_ref):
    x = x_ref[...]            # (TB, D), input dtype (no upcast of the stream)
    w = w_ref[...]            # (1, D), broadcast along sublanes
    b = b_ref[0]              # scalar bias from SMEM

    # VPU multiply + XLU lane reduction; accumulate in f32.
    prod = x * w                                                   # (TB, D)
    logits = jnp.sum(prod, axis=-1, keepdims=True, dtype=jnp.float32) + b
    o_ref[...] = jax.nn.sigmoid(logits).astype(o_ref.dtype)


def _pick_batch_tile(batch, input_dim, itemsize, max_tile_rows):
    # Single-buffer budget ~6 MiB so the double-buffered x tile (2x) plus the
    # resident w row and output buffers fit v5e's default 16 MiB scoped VMEM
    # (and trivially fit v6e/v7x's 32 MiB) without raising vmem_limit_bytes.
    budget_bytes = 6 * 1024 * 1024
    tb = budget_bytes // max(1, input_dim * itemsize)
    tb = max(8, min(int(max_tile_rows), tb))
    tb = (tb // 8) * 8                     # multiple of 8 sublanes
    if tb >= batch:
        tb = batch                         # full-extent block is always legal
    return tb


def mlp_forward(x, w, b, *, max_tile_rows=1024):
    """sigmoid(x @ w + b), matching torch.sigmoid(nn.Linear(input_dim, 1)(x)).

    x: [batch, input_dim]
    w: [input_dim, 1]   (transpose of torch's [1, input_dim] weight)
    b: [1, 1]
    returns [batch, 1] in x.dtype
    """
    batch, input_dim = x.shape
    itemsize = jnp.dtype(x.dtype).itemsize
    tb = _pick_batch_tile(batch, input_dim, itemsize, max_tile_rows)
    grid = (pl.cdiv(batch, tb),)

    w_row = jnp.reshape(w, (1, input_dim))                 # lane-dense weight row
    b_flat = jnp.asarray(b, dtype=jnp.float32).reshape((1,))  # SMEM scalar

    return pl.pallas_call(
        _mlp_kernel,
        out_shape=jax.ShapeDtypeStruct((batch, 1), x.dtype),
        grid=grid,
        in_specs=[
            pl.BlockSpec((tb, input_dim), lambda i: (i, 0)),        # streamed x
            pl.BlockSpec((1, input_dim), lambda i: (0, 0)),         # resident w
            pl.BlockSpec(memory_space=pltpu.MemorySpace.SMEM),      # scalar bias
        ],
        # (TB, 1) output is lane-sparse (masked stores); acceptable since the
        # output stream is a tiny fraction of total bytes for the x-dominated op.
        out_specs=pl.BlockSpec((tb, 1), lambda i: (i, 0)),
        compiler_params=pltpu.CompilerParams(
            dimension_semantics=("parallel",),
        ),
    )(x, w_row, b_flat)


def _reference(x, w, b):
    return jax.nn.sigmoid(x @ w + b)


if __name__ == "__main__":
    key = jax.random.PRNGKey(0)

    # Small shapes consistent with the module (single linear layer -> sigmoid).
    batch, input_dim = 8, 32
    kx, kw, kb, kx2 = jax.random.split(key, 4)
    x = jax.random.normal(kx, (batch, input_dim), dtype=jnp.float32)
    # Deterministic init mimicking nn.Linear's uniform(-1/sqrt(D), 1/sqrt(D)).
    bound = 1.0 / (input_dim ** 0.5)
    w = jax.random.uniform(kw, (input_dim, 1), jnp.float32, -bound, bound)
    b = jax.random.uniform(kb, (1, 1), jnp.float32, -bound, bound)

    out = mlp_forward(x, w, b)
    jax.block_until_ready(out)
    assert out.shape == (batch, 1)
    assert jnp.allclose(out, _reference(x, w, b), atol=1e-5, rtol=1e-5)

    # Exercise the tiled / partial-trailing-block path (grid > 1, batch % TB != 0).
    batch2 = 200
    x2 = jax.random.normal(kx2, (batch2, input_dim), dtype=jnp.float32)
    out2 = mlp_forward(x2, w, b, max_tile_rows=64)
    jax.block_until_ready(out2)
    assert out2.shape == (batch2, 1)
    assert jnp.allclose(out2, _reference(x2, w, b), atol=1e-5, rtol=1e-5)

    # TODO(synk): the PyTorch module's train() loop (Adam + BCELoss backward)
    # is training logic, not part of forward(), and is not implemented here.
    print("KERNEL_OK")
</pallas_src>

<mosaic_0001>
module attributes {stable_mosaic.version = 11 : i64} {
  func.func @_mlp_kernel(%arg0: i32, %arg1: memref<8x32xf32, #tpu.memory_space<vmem>>, %arg2: memref<1x32xf32, #tpu.memory_space<vmem>>, %arg3: memref<1xf32, #tpu.memory_space<smem>>, %arg4: memref<8x1xf32, #tpu.memory_space<vmem>>) attributes {dimension_semantics = [#tpu.dimension_semantics<parallel>], iteration_bounds = array<i64: 1>, scalar_prefetch = 0 : i64, scratch_operands = 0 : i64, tpu.core_type = #tpu.core_type<tc>, window_params = [{transform_indices = @transform_0, window_bounds = array<i64: 8, 32>}, {pipeline_mode = #tpu.pipeline_mode<synchronous>, transform_indices = @transform_1, window_bounds = array<i64: 1, 32>}, {transform_indices = @transform_2, window_bounds = array<i64: 1>}, {transform_indices = @transform_3, window_bounds = array<i64: 8, 1>}]} {
    %c0 = arith.constant 0 : index
    %c0_0 = arith.constant 0 : index
    %0 = vector.load %arg1[%c0, %c0_0] : memref<8x32xf32, #tpu.memory_space<vmem>>, vector<8x32xf32>
    %c0_1 = arith.constant 0 : index
    %c0_2 = arith.constant 0 : index
    %1 = vector.load %arg2[%c0_1, %c0_2] : memref<1x32xf32, #tpu.memory_space<vmem>>, vector<1x32xf32>
    %c0_3 = arith.constant 0 : index
    %2 = memref.load %arg3[%c0_3] : memref<1xf32, #tpu.memory_space<smem>>
    %3 = vector.broadcast %1 : vector<1x32xf32> to vector<8x32xf32>
    %4 = arith.mulf %0, %3 : vector<8x32xf32>
    %cst = arith.constant dense<0.000000e+00> : vector<8xf32>
    %5 = vector.multi_reduction <add>, %4, %cst [1] : vector<8x32xf32> to vector<8xf32>
    %6 = vector.shape_cast %5 : vector<8xf32> to vector<8x1xf32>
    %7 = vector.broadcast %2 : f32 to vector<8x1xf32>
    %8 = arith.addf %6, %7 : vector<8x1xf32>
    %9 = arith.negf %8 : vector<8x1xf32>
    %10 = math.exp %9 : vector<8x1xf32>
    %cst_4 = arith.constant 1.000000e+00 : f32
    %11 = vector.broadcast %cst_4 : f32 to vector<8x1xf32>
    %12 = arith.addf %11, %10 : vector<8x1xf32>
    %13 = arith.divf %11, %12 : vector<8x1xf32>
    %c0_5 = arith.constant 0 : index
    %c0_6 = arith.constant 0 : index
    %14 = vector.load %arg4[%c0_5, %c0_6] : memref<8x1xf32, #tpu.memory_space<vmem>>, vector<8x1xf32>
    tpu.vector_store %arg4[%c0_5, %c0_6], %13 {strides = array<i32>} : memref<8x1xf32, #tpu.memory_space<vmem>>, vector<8x1xf32>,
    return
  }
  func.func @transform_0(%arg0: i32) -> (i32, i32) {
    %c0_i32 = arith.constant 0 : i32
    %c0_i32_0 = arith.constant 0 : i32
    return %arg0, %c0_i32 : i32, i32
  }
  func.func @transform_1(%arg0: i32) -> (i32, i32) {
    %c0_i32 = arith.constant 0 : i32
    %c0_i32_0 = arith.constant 0 : i32
    %c0_i32_1 = arith.constant 0 : i32
    return %c0_i32, %c0_i32_0 : i32, i32
  }
  func.func @transform_2(%arg0: i32) -> i32 {
    %c0_i32 = arith.constant 0 : i32
    %c0_i32_0 = arith.constant 0 : i32
    return %c0_i32 : i32
  }
  func.func @transform_3(%arg0: i32) -> (i32, i32) {
    %c0_i32 = arith.constant 0 : i32
    %c0_i32_0 = arith.constant 0 : i32
    return %arg0, %c0_i32 : i32, i32
  }
}

</mosaic_0001>

<bundles_post_ra>
// kernel: tpu_custom_call.1
= control target key start
LH: loop header
LB: loop body
LE: loop exit
PB: predicated region body
PF: predicated region fallthrough
CT: control target
= control target key end

     0   :  { %9 = vsyncpa [#allocation4], 0  ;;  %s85_s12 = smov [#allocation3]   ;;  %s118_s0 = inlined_call_operand.hbm [shape: f32[8,32], index: 0, kind: input, shape index: {}]   ;;  %s119_s1 = inlined_call_operand.vmem [shape: f32[1,32], index: 1, kind: input, shape index: {}]   ;;  %s120_s2 = inlined_call_operand.<no memory space> [shape: f32[1], index: 2, kind: input, shape index: {}]   ;;  %s121_s3 = inlined_call_operand.vmem [shape: f32[8,1], index: 3, kind: output, shape index: {}]  }
   0x1   :  { %s16_s13 = sshll.u32 %s85_s12, 4  ;;  %s17_s13 = int_to_ptr.vmem [resolvable:$true] %s16_s13 }
   0x2   :  { %s71_s14 = scalar_lea.vmem %s17_s13, 128  ;;  %p76_p1 = scmp.lt.s32.totalorder %s17_s13, %s17_s13 }
   0x3   :  { %p72_p0 = scmp.ne.s32.totalorder %s17_s13, %s71_s14  ;;  %p77_p2 = scmp.lt.s32.totalorder %s71_s14, %s71_s14 }
   0x5   :  { %p78_p3 = por %p77_p2, %p76_p1 }
   0x7   :  { %p79_p4 = pnand %p78_p3, %p72_p0 }
   0x9   :  { %82 = shalt.err (!%p79_p4)
}
   0xa   :  { %19 = dma.hbm_to_vmem [thread:$0]  %s118_s0, 128, %s17_s13, [#allocation4]  }
   0xb   :  { %83 = dma.done.wait [#allocation4], 128  }
   0xc   :  { %84 = vsyncadd [#allocation4], 4294967168  ;;  %v27_v0 = vld [vmem:[#allocation3] sm:$0xff]  ;;  %vm37_vm0 = vcmask 261120   ;;  %v41_v4 = vstv %s120_s2  ;;  %vm49_vm1 = vcmask 7168  }
   0xd   :  { %v56_v1 = vld [vmem:[%s119_s1] ss:$0 sm:$0xff] }
   0xe   :  { %v36_v2 = vmul.f32 %v56_v1, %v27_v0 }
  0x10   :  { %v38_v3 = vsel %vm37_vm0, %v36_v2, 0.0 }
  0x11   :  { %39 = vadd.xlane.f32.xlu0 %v38_v3 }
  0x9a   :  { %v40_v5 = vpop.xlane.xlu0 %39 }
  0x9b   :  { %v42_v6 = vadd.f32 %v41_v4, %v40_v5 }
  0x9d   :  { %v57_v7 = vmul.f32 -1.442695, %v42_v6 }
  0x9f   :  { %59 = vpow2.f32 %v57_v7 }
  0xac   :  { %v60_v8 = vpop.eup %59 }
  0xad   :  { %v46_v9 = vadd.f32 1.0, %v60_v8 }
  0xaf   :  { %61 = vrcp.f32 %v46_v9 }
  0xbc   :  { %v62_v10 = vpop.eup %61 }
  0xbd   :  { %50 = vst.msk [vmem:[%s121_s3] sm:$0xff] %vm49_vm1, %v62_v10 }
  0xbe   :  { %55 = vsyncpa [#allocation4], 1 }

</bundles_post_ra>
